<compile_context>
chip_gen: v7x
topology: tpu7x:2x2x1
jax: 0.10.0
libtpu: 0.0.40
codegen_flags: <defaults>
</compile_context>

<pallas_src>
import jax
import jax.numpy as jnp
from jax.experimental import pallas as pl
from jax.experimental.pallas import tpu as pltpu


def _round_up(x, m):
    return ((x + m - 1) // m) * m


def _pick_hw_tile(hw, cap=512):
    """Largest multiple-of-128 divisor of hw that is <= cap (lane-dense tiles
    of ~512 lanes hit ~85% of HBM roofline and stay well inside v5e/v7x VMEM).
    Falls back to the full extent when hw is not 128-aligned."""
    if hw % 128 != 0:
        return hw
    t = max(128, min(cap, hw) - (min(cap, hw) % 128))
    while hw % t != 0:
        t -= 128
    return t


def make_siamese_kernel(TB, C, F, D, HW, P):
    """Fused kernel: backbone 1x1-conv+ReLU -> mean pool -> Linear(F,D) for
    both images, then classifier Linear(2D,D)+ReLU+Linear(D,1)+tanh."""
    pad = P - (2 * D + 2)

    def kernel(xa_ref, xb_ref, wbbT_ref, bbb_ref, wds_ref, bds_ref,
               w1a_ref, w1b_ref, b1_ref, w2_ref, b2_ref,
               out_ref, acc_a, acc_b):
        # grid = (batch_blocks [parallel], hw_blocks [arbitrary, reduction])
        hw_step = pl.program_id(1)

        @pl.when(hw_step == 0)
        def _init():
            acc_a[...] = jnp.zeros_like(acc_a)
            acc_b[...] = jnp.zeros_like(acc_b)

        wbbT = wbbT_ref[...]        # (F, C)  backbone weight, pre-transposed
        bias = bbb_ref[...]         # (F, 1)  backbone bias (column form)

        # Backbone conv + ReLU on the (C, THW) tile of each image, summed over
        # the lane (HW) axis and accumulated.  Plain 2-D MXU matmuls per batch
        # row keep HW lane-dense with no in-kernel relayout of the image.
        for b in range(TB):
            fa = jnp.dot(wbbT, xa_ref[b], preferred_element_type=jnp.float32)
            fa = jnp.maximum(fa + bias, 0.0)                     # (F, THW)
            acc_a[b:b + 1, :] = acc_a[b:b + 1, :] + fa.sum(axis=-1)[None, :]

            fb = jnp.dot(wbbT, xb_ref[b], preferred_element_type=jnp.float32)
            fb = jnp.maximum(fb + bias, 0.0)
            acc_b[b:b + 1, :] = acc_b[b:b + 1, :] + fb.sum(axis=-1)[None, :]

        @pl.when(hw_step == pl.num_programs(1) - 1)
        def _finalize():
            inv_hw = 1.0 / HW
            pooled_a = acc_a[...] * inv_hw                       # (TB, F)
            pooled_b = acc_b[...] * inv_hw

            # feature_dim_reduce: AdaptiveAvgPool2d(1)+Flatten already done ->
            # Linear(F, D).  Biases only added once here, not per HW tile.
            ra = jnp.dot(pooled_a, wds_ref[...],
                         preferred_element_type=jnp.float32) + bds_ref[...]
            rb = jnp.dot(pooled_b, wds_ref[...],
                         preferred_element_type=jnp.float32) + bds_ref[...]

            # classifier with the concat folded into split w1: cat([ra,rb]) @ w1
            # == ra @ w1_a + rb @ w1_b.
            h1 = (jnp.dot(ra, w1a_ref[...], preferred_element_type=jnp.float32)
                  + jnp.dot(rb, w1b_ref[...], preferred_element_type=jnp.float32)
                  + b1_ref[...])
            h1 = jnp.maximum(h1, 0.0)
            logits = jnp.dot(h1, w2_ref[...],
                             preferred_element_type=jnp.float32) + b2_ref[...]
            preds = jnp.tanh(logits)

            # Pack everything into one lane-dense (TB, P) output slab.
            out_ref[:, 0:D] = ra
            out_ref[:, D:2 * D] = rb
            out_ref[:, 2 * D:2 * D + 1] = logits
            out_ref[:, 2 * D + 1:2 * D + 2] = preds
            if pad > 0:
                out_ref[:, 2 * D + 2:P] = jnp.zeros((TB, pad), jnp.float32)

    return kernel


def siamese_forward(image_a, image_b, params, *, hw_tile=None):
    """Returns dict(logits=(B,), preds=(B,), features=(B, 2*inner_dim))."""
    B, C, H, W = image_a.shape
    HW = H * W
    F = params["wbb"].shape[1]       # backbone.feature_size
    D = params["wds"].shape[1]       # inner_dim (assumes feature_size > inner_dim)

    # Native channel-first layout, HW flattened onto the lane axis (free reshape,
    # no HBM transpose pass).
    xa = image_a.reshape(B, C, HW).astype(jnp.float32)
    xb = image_b.reshape(B, C, HW).astype(jnp.float32)

    if hw_tile is None:
        hw_tile = _pick_hw_tile(HW)
    assert HW % hw_tile == 0
    grid_hw = HW // hw_tile

    TB = 8 if B % 8 == 0 else B       # batch tile (output block needs TB%8==0 or TB==B)
    grid_b = B // TB

    P = _round_up(2 * D + 2, 128)     # lane-dense packed output width

    # One-time tiny weight preprocessing (wrapper-side XLA, negligible).
    wbbT = params["wbb"].T                       # (F, C)
    bbb = params["bbb"].reshape(F, 1)            # (F, 1)
    wds, bds = params["wds"], params["bds"]      # (F, D), (1, D)
    w1a = params["w1"][:D]                       # (D, D)
    w1b = params["w1"][D:]                       # (D, D)
    b1, w2, b2 = params["b1"], params["w2"], params["b2"]

    kernel = make_siamese_kernel(TB, C, F, D, HW, P)

    def full_spec(arr):
        shape = arr.shape
        return pl.BlockSpec(shape, lambda b, h, _s=len(shape): (0,) * _s)

    grid_spec = pltpu.PrefetchScalarGridSpec(
        num_scalar_prefetch=0,
        grid=(grid_b, grid_hw),
        in_specs=[
            pl.BlockSpec((TB, C, hw_tile), lambda b, h: (b, 0, h)),   # image_a
            pl.BlockSpec((TB, C, hw_tile), lambda b, h: (b, 0, h)),   # image_b
            full_spec(wbbT), full_spec(bbb),
            full_spec(wds), full_spec(bds),
            full_spec(w1a), full_spec(w1b), full_spec(b1),
            full_spec(w2), full_spec(b2),
        ],
        out_specs=pl.BlockSpec((TB, P), lambda b, h: (b, 0)),
        scratch_shapes=[pltpu.VMEM((TB, F), jnp.float32),   # pooled-sum acc, image a
                        pltpu.VMEM((TB, F), jnp.float32)],  # pooled-sum acc, image b
    )

    slab = pl.pallas_call(
        kernel,
        out_shape=jax.ShapeDtypeStruct((B, P), jnp.float32),
        grid_spec=grid_spec,
        compiler_params=pltpu.CompilerParams(
            dimension_semantics=("parallel", "arbitrary"),
            # Explicit budget: tiles chosen well under v7x's 64 MiB physical VMEM.
            vmem_limit_bytes=32 * 1024 * 1024,
        ),
    )(xa, xb, wbbT, bbb, wds, bds, w1a, w1b, b1, w2, b2)

    features = slab[:, : 2 * D]
    logits = slab[:, 2 * D]
    preds = slab[:, 2 * D + 1]
    return {"logits": logits, "preds": preds, "features": features}


# ---------------------------------------------------------------------------
# Pure-JAX reference (correctness check)
# ---------------------------------------------------------------------------
def _ref_forward(image_a, image_b, p):
    def emb(x):
        B, C, H, W = x.shape
        xr = jnp.transpose(x, (0, 2, 3, 1)).reshape(B, H * W, C)
        feat = jnp.maximum(jnp.einsum("bpc,cf->bpf", xr, p["wbb"]) + p["bbb"], 0.0)
        pooled = feat.mean(axis=1)
        return pooled @ p["wds"] + p["bds"]

    ea, eb = emb(image_a), emb(image_b)
    feats = jnp.concatenate([ea, eb], axis=1)
    h = jnp.maximum(feats @ p["w1"] + p["b1"], 0.0)
    logits = (h @ p["w2"] + p["b2"])[:, 0]
    return {"logits": logits, "preds": jnp.tanh(logits), "features": feats}


if __name__ == "__main__":
    # Small, module-consistent shapes.
    B, C_IN, H, W = 2, 4, 16, 16
    FEATURE_SIZE = 64      # backbone.feature_size
    INNER_DIM = 32         # inner_dim (feature_size > inner_dim -> Linear downsample)

    key = jax.random.PRNGKey(0)
    keys = jax.random.split(key, 10)

    params = {
        # synthetic backbone: 1x1 conv (C_in -> F) + ReLU
        "wbb": jax.random.normal(keys[0], (C_IN, FEATURE_SIZE), jnp.float32) * 0.1,
        "bbb": jax.random.normal(keys[1], (1, FEATURE_SIZE), jnp.float32) * 0.1,
        # feature_dim_reduce downsample Linear(F, inner_dim), stored as (in, out)
        "wds": jax.random.normal(keys[2], (FEATURE_SIZE, INNER_DIM), jnp.float32) * 0.1,
        "bds": jax.random.normal(keys[3], (1, INNER_DIM), jnp.float32) * 0.1,
        # classifier: Linear(2*inner_dim, inner_dim) -> ReLU -> Linear(inner_dim, 1)
        "w1": jax.random.normal(keys[4], (2 * INNER_DIM, INNER_DIM), jnp.float32) * 0.1,
        "b1": jax.random.normal(keys[5], (1, INNER_DIM), jnp.float32) * 0.1,
        "w2": jax.random.normal(keys[6], (INNER_DIM, 1), jnp.float32) * 0.1,
        "b2": jax.random.normal(keys[7], (1, 1), jnp.float32) * 0.1,
    }

    image_a = jax.random.normal(keys[8], (B, C_IN, H, W), jnp.float32)
    image_b = jax.random.normal(keys[9], (B, C_IN, H, W), jnp.float32)

    ref = _ref_forward(image_a, image_b, params)

    # Run once with an explicit 128-wide HW tile (exercises the multi-step
    # accumulate path, grid=(1, 2)) and once with the default tiling.
    for tile in (128, None):
        out = siamese_forward(image_a, image_b, params, hw_tile=tile)
        jax.block_until_ready(out)
        assert out["logits"].shape == (B,)
        assert out["preds"].shape == (B,)
        assert out["features"].shape == (B, 2 * INNER_DIM)
        assert jnp.allclose(out["logits"], ref["logits"], atol=1e-4, rtol=1e-4)
        assert jnp.allclose(out["preds"], ref["preds"], atol=1e-4, rtol=1e-4)
        assert jnp.allclose(out["features"], ref["features"], atol=1e-4, rtol=1e-4)

    print("KERNEL_OK")
</pallas_src>

<mosaic_0001>
module attributes {stable_mosaic.version = 11 : i64} {
  func.func @kernel(%arg0: i32, %arg1: i32, %arg2: memref<2x4x128xf32, #tpu.memory_space<vmem>>, %arg3: memref<2x4x128xf32, #tpu.memory_space<vmem>>, %arg4: memref<64x4xf32, #tpu.memory_space<vmem>>, %arg5: memref<64x1xf32, #tpu.memory_space<vmem>>, %arg6: memref<64x32xf32, #tpu.memory_space<vmem>>, %arg7: memref<1x32xf32, #tpu.memory_space<vmem>>, %arg8: memref<32x32xf32, #tpu.memory_space<vmem>>, %arg9: memref<32x32xf32, #tpu.memory_space<vmem>>, %arg10: memref<1x32xf32, #tpu.memory_space<vmem>>, %arg11: memref<32x1xf32, #tpu.memory_space<vmem>>, %arg12: memref<1x1xf32, #tpu.memory_space<vmem>>, %arg13: memref<2x128xf32, #tpu.memory_space<vmem>>, %arg14: memref<2x64xf32, #tpu.memory_space<vmem>>, %arg15: memref<2x64xf32, #tpu.memory_space<vmem>>) attributes {dimension_semantics = [#tpu.dimension_semantics<parallel>, #tpu.dimension_semantics<arbitrary>], iteration_bounds = array<i64: 1, 2>, scalar_prefetch = 0 : i64, scratch_operands = 2 : i64, tpu.core_type = #tpu.core_type<tc>, window_params = [{transform_indices = @transform_0, window_bounds = array<i64: 2, 4, 128>}, {transform_indices = @transform_1, window_bounds = array<i64: 2, 4, 128>}, {pipeline_mode = #tpu.pipeline_mode<synchronous>, transform_indices = @transform_2, window_bounds = array<i64: 64, 4>}, {pipeline_mode = #tpu.pipeline_mode<synchronous>, transform_indices = @transform_3, window_bounds = array<i64: 64, 1>}, {pipeline_mode = #tpu.pipeline_mode<synchronous>, transform_indices = @transform_4, window_bounds = array<i64: 64, 32>}, {pipeline_mode = #tpu.pipeline_mode<synchronous>, transform_indices = @transform_5, window_bounds = array<i64: 1, 32>}, {pipeline_mode = #tpu.pipeline_mode<synchronous>, transform_indices = @transform_6, window_bounds = array<i64: 32, 32>}, {pipeline_mode = #tpu.pipeline_mode<synchronous>, transform_indices = @transform_7, window_bounds = array<i64: 32, 32>}, {pipeline_mode = #tpu.pipeline_mode<synchronous>, transform_indices = @transform_8, window_bounds = array<i64: 1, 32>}, {pipeline_mode = #tpu.pipeline_mode<synchronous>, transform_indices = @transform_9, window_bounds = array<i64: 32, 1>}, {pipeline_mode = #tpu.pipeline_mode<synchronous>, transform_indices = @transform_10, window_bounds = array<i64: 1, 1>}, {transform_indices = @transform_11, window_bounds = array<i64: 2, 128>}]} {
    %c0_i32 = arith.constant 0 : i32
    %0 = arith.cmpi eq, %arg1, %c0_i32 : i32
    %1 = arith.extui %0 : i1 to i32
    %c0_i32_0 = arith.constant 0 : i32
    %2 = arith.cmpi ne, %1, %c0_i32_0 : i32
    scf.if %2 {
      %cst_43 = arith.constant 0.000000e+00 : f32
      %56 = vector.broadcast %cst_43 : f32 to vector<2x64xf32>
      %c0_44 = arith.constant 0 : index
      %c0_45 = arith.constant 0 : index
      %57 = vector.load %arg14[%c0_44, %c0_45] : memref<2x64xf32, #tpu.memory_space<vmem>>, vector<2x64xf32>
      tpu.vector_store %arg14[%c0_44, %c0_45], %56 {strides = array<i32>} : memref<2x64xf32, #tpu.memory_space<vmem>>, vector<2x64xf32>,
      %cst_46 = arith.constant 0.000000e+00 : f32
      %58 = vector.broadcast %cst_46 : f32 to vector<2x64xf32>
      %c0_47 = arith.constant 0 : index
      %c0_48 = arith.constant 0 : index
      %59 = vector.load %arg15[%c0_47, %c0_48] : memref<2x64xf32, #tpu.memory_space<vmem>>, vector<2x64xf32>
      tpu.vector_store %arg15[%c0_47, %c0_48], %58 {strides = array<i32>} : memref<2x64xf32, #tpu.memory_space<vmem>>, vector<2x64xf32>,
    } else {
    }
    %c0 = arith.constant 0 : index
    %c0_1 = arith.constant 0 : index
    %3 = vector.load %arg4[%c0, %c0_1] : memref<64x4xf32, #tpu.memory_space<vmem>>, vector<64x4xf32>
    %c0_2 = arith.constant 0 : index
    %c0_3 = arith.constant 0 : index
    %4 = vector.load %arg5[%c0_2, %c0_3] : memref<64x1xf32, #tpu.memory_space<vmem>>, vector<64x1xf32>
    %c0_4 = arith.constant 0 : index
    %c0_5 = arith.constant 0 : index
    %c0_6 = arith.constant 0 : index
    %5 = vector.load %arg2[%c0_4, %c0_5, %c0_6] : memref<2x4x128xf32, #tpu.memory_space<vmem>>, vector<1x4x128xf32>
    %6 = vector.shape_cast %5 : vector<1x4x128xf32> to vector<4x128xf32>
    %cst = arith.constant dense<0.000000e+00> : vector<64x128xf32>
    %7 = tpu.matmul %3, %6, %cst {dimension_numbers = #tpu.dot_dimension_numbers<[1], [0], [0], [1], [0, 0, 1, 1], [], []>} : vector<64x4xf32>, vector<4x128xf32>, vector<64x128xf32> -> vector<64x128xf32>
    %8 = vector.broadcast %4 : vector<64x1xf32> to vector<64x128xf32>
    %9 = arith.addf %7, %8 : vector<64x128xf32>
    %cst_7 = arith.constant 0.000000e+00 : f32
    %10 = vector.broadcast %cst_7 : f32 to vector<64x128xf32>
    %11 = arith.maximumf %9, %10 : vector<64x128xf32>
    %c0_8 = arith.constant 0 : index
    %c0_9 = arith.constant 0 : index
    %12 = vector.load %arg14[%c0_8, %c0_9] : memref<2x64xf32, #tpu.memory_space<vmem>>, vector<1x64xf32>
    %cst_10 = arith.constant dense<0.000000e+00> : vector<64xf32>
    %13 = vector.multi_reduction <add>, %11, %cst_10 [1] : vector<64x128xf32> to vector<64xf32>
    %14 = vector.shape_cast %13 : vector<64xf32> to vector<1x64xf32>
    %15 = arith.addf %12, %14 : vector<1x64xf32>
    %c0_11 = arith.constant 0 : index
    %c0_12 = arith.constant 0 : index
    %16 = vector.load %arg14[%c0_11, %c0_12] : memref<2x64xf32, #tpu.memory_space<vmem>>, vector<1x64xf32>
    tpu.vector_store %arg14[%c0_11, %c0_12], %15 {strides = array<i32>} : memref<2x64xf32, #tpu.memory_space<vmem>>, vector<1x64xf32>,
    %c0_13 = arith.constant 0 : index
    %c0_14 = arith.constant 0 : index
    %c0_15 = arith.constant 0 : index
    %17 = vector.load %arg3[%c0_13, %c0_14, %c0_15] : memref<2x4x128xf32, #tpu.memory_space<vmem>>, vector<1x4x128xf32>
    %18 = vector.shape_cast %17 : vector<1x4x128xf32> to vector<4x128xf32>
    %cst_16 = arith.constant dense<0.000000e+00> : vector<64x128xf32>
    %19 = tpu.matmul %3, %18, %cst_16 {dimension_numbers = #tpu.dot_dimension_numbers<[1], [0], [0], [1], [0, 0, 1, 1], [], []>} : vector<64x4xf32>, vector<4x128xf32>, vector<64x128xf32> -> vector<64x128xf32>
    %20 = vector.broadcast %4 : vector<64x1xf32> to vector<64x128xf32>
    %21 = arith.addf %19, %20 : vector<64x128xf32>
    %cst_17 = arith.constant 0.000000e+00 : f32
    %22 = vector.broadcast %cst_17 : f32 to vector<64x128xf32>
    %23 = arith.maximumf %21, %22 : vector<64x128xf32>
    %c0_18 = arith.constant 0 : index
    %c0_19 = arith.constant 0 : index
    %24 = vector.load %arg15[%c0_18, %c0_19] : memref<2x64xf32, #tpu.memory_space<vmem>>, vector<1x64xf32>
    %cst_20 = arith.constant dense<0.000000e+00> : vector<64xf32>
    %25 = vector.multi_reduction <add>, %23, %cst_20 [1] : vector<64x128xf32> to vector<64xf32>
    %26 = vector.shape_cast %25 : vector<64xf32> to vector<1x64xf32>
    %27 = arith.addf %24, %26 : vector<1x64xf32>
    %c0_21 = arith.constant 0 : index
    %c0_22 = arith.constant 0 : index
    %28 = vector.load %arg15[%c0_21, %c0_22] : memref<2x64xf32, #tpu.memory_space<vmem>>, vector<1x64xf32>
    tpu.vector_store %arg15[%c0_21, %c0_22], %27 {strides = array<i32>} : memref<2x64xf32, #tpu.memory_space<vmem>>, vector<1x64xf32>,
    %c1 = arith.constant 1 : index
    %c0_23 = arith.constant 0 : index
    %c0_24 = arith.constant 0 : index
    %29 = vector.load %arg2[%c1, %c0_23, %c0_24] : memref<2x4x128xf32, #tpu.memory_space<vmem>>, vector<1x4x128xf32>
    %30 = vector.shape_cast %29 : vector<1x4x128xf32> to vector<4x128xf32>
    %cst_25 = arith.constant dense<0.000000e+00> : vector<64x128xf32>
    %31 = tpu.matmul %3, %30, %cst_25 {dimension_numbers = #tpu.dot_dimension_numbers<[1], [0], [0], [1], [0, 0, 1, 1], [], []>} : vector<64x4xf32>, vector<4x128xf32>, vector<64x128xf32> -> vector<64x128xf32>
    %32 = vector.broadcast %4 : vector<64x1xf32> to vector<64x128xf32>
    %33 = arith.addf %31, %32 : vector<64x128xf32>
    %cst_26 = arith.constant 0.000000e+00 : f32
    %34 = vector.broadcast %cst_26 : f32 to vector<64x128xf32>
    %35 = arith.maximumf %33, %34 : vector<64x128xf32>
    %c1_27 = arith.constant 1 : index
    %c0_28 = arith.constant 0 : index
    %36 = vector.load %arg14[%c1_27, %c0_28] : memref<2x64xf32, #tpu.memory_space<vmem>>, vector<1x64xf32>
    %cst_29 = arith.constant dense<0.000000e+00> : vector<64xf32>
    %37 = vector.multi_reduction <add>, %35, %cst_29 [1] : vector<64x128xf32> to vector<64xf32>
    %38 = vector.shape_cast %37 : vector<64xf32> to vector<1x64xf32>
    %39 = arith.addf %36, %38 : vector<1x64xf32>
    %c1_30 = arith.constant 1 : index
    %c0_31 = arith.constant 0 : index
    %40 = vector.load %arg14[%c1_30, %c0_31] : memref<2x64xf32, #tpu.memory_space<vmem>>, vector<1x64xf32>
    tpu.vector_store %arg14[%c1_30, %c0_31], %39 {strides = array<i32>} : memref<2x64xf32, #tpu.memory_space<vmem>>, vector<1x64xf32>,
    %c1_32 = arith.constant 1 : index
    %c0_33 = arith.constant 0 : index
    %c0_34 = arith.constant 0 : index
    %41 = vector.load %arg3[%c1_32, %c0_33, %c0_34] : memref<2x4x128xf32, #tpu.memory_space<vmem>>, vector<1x4x128xf32>
    %42 = vector.shape_cast %41 : vector<1x4x128xf32> to vector<4x128xf32>
    %cst_35 = arith.constant dense<0.000000e+00> : vector<64x128xf32>
    %43 = tpu.matmul %3, %42, %cst_35 {dimension_numbers = #tpu.dot_dimension_numbers<[1], [0], [0], [1], [0, 0, 1, 1], [], []>} : vector<64x4xf32>, vector<4x128xf32>, vector<64x128xf32> -> vector<64x128xf32>
    %44 = vector.broadcast %4 : vector<64x1xf32> to vector<64x128xf32>
    %45 = arith.addf %43, %44 : vector<64x128xf32>
    %cst_36 = arith.constant 0.000000e+00 : f32
    %46 = vector.broadcast %cst_36 : f32 to vector<64x128xf32>
    %47 = arith.maximumf %45, %46 : vector<64x128xf32>
    %c1_37 = arith.constant 1 : index
    %c0_38 = arith.constant 0 : index
    %48 = vector.load %arg15[%c1_37, %c0_38] : memref<2x64xf32, #tpu.memory_space<vmem>>, vector<1x64xf32>
    %cst_39 = arith.constant dense<0.000000e+00> : vector<64xf32>
    %49 = vector.multi_reduction <add>, %47, %cst_39 [1] : vector<64x128xf32> to vector<64xf32>
    %50 = vector.shape_cast %49 : vector<64xf32> to vector<1x64xf32>
    %51 = arith.addf %48, %50 : vector<1x64xf32>
    %c1_40 = arith.constant 1 : index
    %c0_41 = arith.constant 0 : index
    %52 = vector.load %arg15[%c1_40, %c0_41] : memref<2x64xf32, #tpu.memory_space<vmem>>, vector<1x64xf32>
    tpu.vector_store %arg15[%c1_40, %c0_41], %51 {strides = array<i32>} : memref<2x64xf32, #tpu.memory_space<vmem>>, vector<1x64xf32>,
    %c1_i32 = arith.constant 1 : i32
    %53 = arith.cmpi eq, %arg1, %c1_i32 : i32
    %54 = arith.extui %53 : i1 to i32
    %c0_i32_42 = arith.constant 0 : i32
    %55 = arith.cmpi ne, %54, %c0_i32_42 : i32
    scf.if %55 {
      %c0_43 = arith.constant 0 : index
      %c0_44 = arith.constant 0 : index
      %56 = vector.load %arg14[%c0_43, %c0_44] : memref<2x64xf32, #tpu.memory_space<vmem>>, vector<2x64xf32>
      %cst_45 = arith.constant 3.906250e-03 : f32
      %57 = vector.broadcast %cst_45 : f32 to vector<2x64xf32>
      %58 = arith.mulf %56, %57 : vector<2x64xf32>
      %c0_46 = arith.constant 0 : index
      %c0_47 = arith.constant 0 : index
      %59 = vector.load %arg15[%c0_46, %c0_47] : memref<2x64xf32, #tpu.memory_space<vmem>>, vector<2x64xf32>
      %cst_48 = arith.constant 3.906250e-03 : f32
      %60 = vector.broadcast %cst_48 : f32 to vector<2x64xf32>
      %61 = arith.mulf %59, %60 : vector<2x64xf32>
      %c0_49 = arith.constant 0 : index
      %c0_50 = arith.constant 0 : index
      %62 = vector.load %arg6[%c0_49, %c0_50] : memref<64x32xf32, #tpu.memory_space<vmem>>, vector<64x32xf32>
      %cst_51 = arith.constant dense<0.000000e+00> : vector<2x32xf32>
      %63 = tpu.matmul %58, %62, %cst_51 {dimension_numbers = #tpu.dot_dimension_numbers<[1], [0], [0], [1], [0, 0, 1, 1], [], []>} : vector<2x64xf32>, vector<64x32xf32>, vector<2x32xf32> -> vector<2x32xf32>
      %c0_52 = arith.constant 0 : index
      %c0_53 = arith.constant 0 : index
      %64 = vector.load %arg7[%c0_52, %c0_53] : memref<1x32xf32, #tpu.memory_space<vmem>>, vector<1x32xf32>
      %65 = vector.broadcast %64 : vector<1x32xf32> to vector<2x32xf32>
      %66 = arith.addf %63, %65 : vector<2x32xf32>
      %c0_54 = arith.constant 0 : index
      %c0_55 = arith.constant 0 : index
      %67 = vector.load %arg6[%c0_54, %c0_55] : memref<64x32xf32, #tpu.memory_space<vmem>>, vector<64x32xf32>
      %cst_56 = arith.constant dense<0.000000e+00> : vector<2x32xf32>
      %68 = tpu.matmul %61, %67, %cst_56 {dimension_numbers = #tpu.dot_dimension_numbers<[1], [0], [0], [1], [0, 0, 1, 1], [], []>} : vector<2x64xf32>, vector<64x32xf32>, vector<2x32xf32> -> vector<2x32xf32>
      %c0_57 = arith.constant 0 : index
      %c0_58 = arith.constant 0 : index
      %69 = vector.load %arg7[%c0_57, %c0_58] : memref<1x32xf32, #tpu.memory_space<vmem>>, vector<1x32xf32>
      %70 = vector.broadcast %69 : vector<1x32xf32> to vector<2x32xf32>
      %71 = arith.addf %68, %70 : vector<2x32xf32>
      %c0_59 = arith.constant 0 : index
      %c0_60 = arith.constant 0 : index
      %72 = vector.load %arg8[%c0_59, %c0_60] : memref<32x32xf32, #tpu.memory_space<vmem>>, vector<32x32xf32>
      %cst_61 = arith.constant dense<0.000000e+00> : vector<2x32xf32>
      %73 = tpu.matmul %66, %72, %cst_61 {dimension_numbers = #tpu.dot_dimension_numbers<[1], [0], [0], [1], [0, 0, 1, 1], [], []>} : vector<2x32xf32>, vector<32x32xf32>, vector<2x32xf32> -> vector<2x32xf32>
      %c0_62 = arith.constant 0 : index
      %c0_63 = arith.constant 0 : index
      %74 = vector.load %arg9[%c0_62, %c0_63] : memref<32x32xf32, #tpu.memory_space<vmem>>, vector<32x32xf32>
      %cst_64 = arith.constant dense<0.000000e+00> : vector<2x32xf32>
      %75 = tpu.matmul %71, %74, %cst_64 {dimension_numbers = #tpu.dot_dimension_numbers<[1], [0], [0], [1], [0, 0, 1, 1], [], []>} : vector<2x32xf32>, vector<32x32xf32>, vector<2x32xf32> -> vector<2x32xf32>
      %76 = arith.addf %73, %75 : vector<2x32xf32>
      %c0_65 = arith.constant 0 : index
      %c0_66 = arith.constant 0 : index
      %77 = vector.load %arg10[%c0_65, %c0_66] : memref<1x32xf32, #tpu.memory_space<vmem>>, vector<1x32xf32>
      %78 = vector.broadcast %77 : vector<1x32xf32> to vector<2x32xf32>
      %79 = arith.addf %76, %78 : vector<2x32xf32>
      %cst_67 = arith.constant 0.000000e+00 : f32
      %80 = vector.broadcast %cst_67 : f32 to vector<2x32xf32>
      %81 = arith.maximumf %79, %80 : vector<2x32xf32>
      %c0_68 = arith.constant 0 : index
      %c0_69 = arith.constant 0 : index
      %82 = vector.load %arg11[%c0_68, %c0_69] : memref<32x1xf32, #tpu.memory_space<vmem>>, vector<32x1xf32>
      %cst_70 = arith.constant dense<0.000000e+00> : vector<2x1xf32>
      %83 = tpu.matmul %81, %82, %cst_70 {dimension_numbers = #tpu.dot_dimension_numbers<[1], [0], [0], [1], [0, 0, 1, 1], [], []>} : vector<2x32xf32>, vector<32x1xf32>, vector<2x1xf32> -> vector<2x1xf32>
      %c0_71 = arith.constant 0 : index
      %c0_72 = arith.constant 0 : index
      %84 = vector.load %arg12[%c0_71, %c0_72] : memref<1x1xf32, #tpu.memory_space<vmem>>, vector<1x1xf32>
      %85 = vector.broadcast %84 : vector<1x1xf32> to vector<2x1xf32>
      %86 = arith.addf %83, %85 : vector<2x1xf32>
      %87 = math.tanh %86 : vector<2x1xf32>
      %c0_73 = arith.constant 0 : index
      %c0_74 = arith.constant 0 : index
      %88 = vector.load %arg13[%c0_73, %c0_74] : memref<2x128xf32, #tpu.memory_space<vmem>>, vector<2x32xf32>
      tpu.vector_store %arg13[%c0_73, %c0_74], %66 {strides = array<i32>} : memref<2x128xf32, #tpu.memory_space<vmem>>, vector<2x32xf32>,
      %c0_75 = arith.constant 0 : index
      %c32 = arith.constant 32 : index
      %89 = vector.load %arg13[%c0_75, %c32] : memref<2x128xf32, #tpu.memory_space<vmem>>, vector<2x32xf32>
      tpu.vector_store %arg13[%c0_75, %c32], %71 {strides = array<i32>} : memref<2x128xf32, #tpu.memory_space<vmem>>, vector<2x32xf32>,
      %c0_76 = arith.constant 0 : index
      %c64 = arith.constant 64 : index
      %90 = vector.load %arg13[%c0_76, %c64] : memref<2x128xf32, #tpu.memory_space<vmem>>, vector<2x1xf32>
      tpu.vector_store %arg13[%c0_76, %c64], %86 {strides = array<i32>} : memref<2x128xf32, #tpu.memory_space<vmem>>, vector<2x1xf32>,
      %c0_77 = arith.constant 0 : index
      %c65 = arith.constant 65 : index
      %91 = vector.load %arg13[%c0_77, %c65] : memref<2x128xf32, #tpu.memory_space<vmem>>, vector<2x1xf32>
      tpu.vector_store %arg13[%c0_77, %c65], %87 {strides = array<i32>} : memref<2x128xf32, #tpu.memory_space<vmem>>, vector<2x1xf32>,
      %cst_78 = arith.constant 0.000000e+00 : f32
      %92 = vector.broadcast %cst_78 : f32 to vector<2x62xf32>
      %c0_79 = arith.constant 0 : index
      %c66 = arith.constant 66 : index
      %93 = vector.load %arg13[%c0_79, %c66] : memref<2x128xf32, #tpu.memory_space<vmem>>, vector<2x62xf32>
      tpu.vector_store %arg13[%c0_79, %c66], %92 {strides = array<i32>} : memref<2x128xf32, #tpu.memory_space<vmem>>, vector<2x62xf32>,
    } else {
    }
    return
  }
  func.func @transform_0(%arg0: i32, %arg1: i32) -> (i32, i32, i32) {
    %c0_i32 = arith.constant 0 : i32
    %c0_i32_0 = arith.constant 0 : i32
    return %arg0, %c0_i32, %arg1 : i32, i32, i32
  }
  func.func @transform_1(%arg0: i32, %arg1: i32) -> (i32, i32, i32) {
    %c0_i32 = arith.constant 0 : i32
    %c0_i32_0 = arith.constant 0 : i32
    return %arg0, %c0_i32, %arg1 : i32, i32, i32
  }
  func.func @transform_2(%arg0: i32, %arg1: i32) -> (i32, i32) {
    %c0_i32 = arith.constant 0 : i32
    %c0_i32_0 = arith.constant 0 : i32
    %c0_i32_1 = arith.constant 0 : i32
    return %c0_i32, %c0_i32_0 : i32, i32
  }
  func.func @transform_3(%arg0: i32, %arg1: i32) -> (i32, i32) {
    %c0_i32 = arith.constant 0 : i32
    %c0_i32_0 = arith.constant 0 : i32
    %c0_i32_1 = arith.constant 0 : i32
    return %c0_i32, %c0_i32_0 : i32, i32
  }
  func.func @transform_4(%arg0: i32, %arg1: i32) -> (i32, i32) {
    %c0_i32 = arith.constant 0 : i32
    %c0_i32_0 = arith.constant 0 : i32
    %c0_i32_1 = arith.constant 0 : i32
    return %c0_i32, %c0_i32_0 : i32, i32
  }
  func.func @transform_5(%arg0: i32, %arg1: i32) -> (i32, i32) {
    %c0_i32 = arith.constant 0 : i32
    %c0_i32_0 = arith.constant 0 : i32
    %c0_i32_1 = arith.constant 0 : i32
    return %c0_i32, %c0_i32_0 : i32, i32
  }
  func.func @transform_6(%arg0: i32, %arg1: i32) -> (i32, i32) {
    %c0_i32 = arith.constant 0 : i32
    %c0_i32_0 = arith.constant 0 : i32
    %c0_i32_1 = arith.constant 0 : i32
    return %c0_i32, %c0_i32_0 : i32, i32
  }
  func.func @transform_7(%arg0: i32, %arg1: i32) -> (i32, i32) {
    %c0_i32 = arith.constant 0 : i32
    %c0_i32_0 = arith.constant 0 : i32
    %c0_i32_1 = arith.constant 0 : i32
    return %c0_i32, %c0_i32_0 : i32, i32
  }
  func.func @transform_8(%arg0: i32, %arg1: i32) -> (i32, i32) {
    %c0_i32 = arith.constant 0 : i32
    %c0_i32_0 = arith.constant 0 : i32
    %c0_i32_1 = arith.constant 0 : i32
    return %c0_i32, %c0_i32_0 : i32, i32
  }
  func.func @transform_9(%arg0: i32, %arg1: i32) -> (i32, i32) {
    %c0_i32 = arith.constant 0 : i32
    %c0_i32_0 = arith.constant 0 : i32
    %c0_i32_1 = arith.constant 0 : i32
    return %c0_i32, %c0_i32_0 : i32, i32
  }
  func.func @transform_10(%arg0: i32, %arg1: i32) -> (i32, i32) {
    %c0_i32 = arith.constant 0 : i32
    %c0_i32_0 = arith.constant 0 : i32
    %c0_i32_1 = arith.constant 0 : i32
    return %c0_i32, %c0_i32_0 : i32, i32
  }
  func.func @transform_11(%arg0: i32, %arg1: i32) -> (i32, i32) {
    %c0_i32 = arith.constant 0 : i32
    %c0_i32_0 = arith.constant 0 : i32
    return %arg0, %c0_i32 : i32, i32
  }
}

</mosaic_0001>

<bundles_post_ra>
// kernel: tpu_custom_call.1
= control target key start
LH: loop header
LB: loop body
LE: loop exit
PB: predicated region body
PF: predicated region fallthrough
CT: control target
= control target key end

     0   :  { %s2801_s0 = inlined_call_operand.vmem [shape: f32[2,4,256], index: 0, kind: input, shape index: {}]   ;;  %s2802_s1 = inlined_call_operand.vmem [shape: f32[2,4,256], index: 1, kind: input, shape index: {}]   ;;  %s2803_s2 = inlined_call_operand.vmem [shape: f32[64,4], index: 2, kind: input, shape index: {}]   ;;  %s2804_s3 = inlined_call_operand.vmem [shape: f32[64,1], index: 3, kind: input, shape index: {}]   ;;  %s2805_s4 = inlined_call_operand.vmem [shape: f32[64,32], index: 4, kind: input, shape index: {}]   ;;  %s2806_s5 = inlined_call_operand.vmem [shape: f32[1,32], index: 5, kind: input, shape index: {}]   ;;  %s2807_s6 = inlined_call_operand.vmem [shape: f32[32,32], index: 6, kind: input, shape index: {}]   ;;  %s2808_s7 = inlined_call_operand.vmem [shape: f32[32,32], index: 7, kind: input, shape index: {}]   ;;  %s2809_s8 = inlined_call_operand.vmem [shape: f32[1,32], index: 8, kind: input, shape index: {}]   ;;  %s2810_s9 = inlined_call_operand.vmem [shape: f32[32,1], index: 9, kind: input, shape index: {}]   ;;  %s2811_s10 = inlined_call_operand.<no memory space> [shape: f32[1,1], index: 10, kind: input, shape index: {}]   ;;  %s2812_s11 = inlined_call_operand.hbm [shape: f32[2,128], index: 11, kind: output, shape index: {}]  }
   0x1   :  { %v16_v0 = vstv %s2811_s10 }
   0x2   :  { %17 = vst [vmem:[#allocation4] sm:$0x1] %v16_v0 }
   0x3   :  { %18 = vsyncpa [#allocation8], 0  ;;  %s2386_s19 = smov 0   ;;  %s2388_s20 = smov 0  }
   0x4   :  { %s2390_s21 = smov 0   ;;  %s2392_s22 = smov 0  }
   0x5   :  { %s2394_s23 = smov 0  }
   0x6 LB: > { %s33_s24 = sadd.s32 1, %s2308_s22  ;;  %p52_p1 = scmp.ne.s32.totalorder %s2300_s20, %s2296_s19  ;;  %s2312_s23 = sphi %s2394_s23, %s24_s23   ;;  %s2308_s22 = sphi %s2392_s22, %s2819_s22   ;;  %s2304_s21 = sphi %s2390_s21, %s2818_s21   ;;  %s2300_s20 = sphi %s2388_s20, %s2817_s20   ;;  %s2296_s19 = sphi %s2386_s19, %s2816_s19  }
   0x7   : > { %p34_p0 = scmp.ge.s32.totalorder %s33_s24, 2  ;;  %p53_p2 = scmp.eq.s32.totalorder %s2312_s23, 0 }
   0x8   : > { %s45_s27 = sadd.s32 1, %s2300_s20  ;;  %p1887_p5 = scmp.ge.s32.totalorder %s2312_s23, 2 }
   0x9   : > { %s2821_s24 = smov (%p34_p0, %s33_s24), 0  ;;  %p2418_p3 = por %p53_p2, %p52_p1 }
   0xa   : > { %s41_s26 = ssub.s32 %s2308_s22, %s2821_s24  ;;  %348 = sbr.rel (%p1887_p5) target bundleno = 31 (0x1f), region = 52 }
   0xb   : > { %p43_p4 = scmp.eq.s32.totalorder %s41_s26, 0 }
   0xd   : > { %s2426_s28 = scalar_select %p43_p4, %s2300_s20, %s45_s27  }
  0x11   : > { %351 = sbr.rel (!%p2418_p3) target bundleno = 24 (0x18), region = 56  ;;  %s353_s29 = sand.u32 (%p2418_p3), 1, %s2300_s20  }
  0x12   : > { %s1889_s30 = sshll.u32 (%p2418_p3), %s2308_s22, 2  ;;  %s1888_s12 = sshll.u32 (%p2418_p3), %s353_s29, 3 }
  0x13   : > { %s360_s15 = scalar_lea.vmem (%p2418_p3), %s2801_s0, %s1889_s30  ;;  %s355_s16 = scalar_lea.vmem (%p2418_p3), [#allocation5], %s1888_s12 }
  0x14   : > { %v376_v1 = vld [vmem:[%s360_s15] sm:$0xf] (%p2418_p3)  ;;  %v378_v2 = vld [vmem:[%s360_s15 + $0x8] sm:$0xf] (%p2418_p3) }
  0x15   : > { %377 = vst [vmem:[%s355_s16] sm:$0xf] (%p2418_p3), %v376_v1  ;;  %379 = vst [vmem:[%s355_s16 + $0x4] sm:$0xf] (%p2418_p3), %v378_v2 }
  0x18 PF: > { %406 = sbr.rel (!%p2418_p3) target bundleno = 31 (0x1f), region = 97  ;;  %s408_s17 = sand.u32 (%p2418_p3), 1, %s2300_s20  }
  0x19   : > { %s1891_s18 = sshll.u32 (%p2418_p3), %s2308_s22, 2  ;;  %s1890_s26 = sshll.u32 (%p2418_p3), %s408_s17, 3 }
  0x1a   : > { %s415_s10 = scalar_lea.vmem (%p2418_p3), %s2802_s1, %s1891_s18  ;;  %s410_s30 = scalar_lea.vmem (%p2418_p3), [#allocation6], %s1890_s26 }
  0x1b   : > { %v431_v3 = vld [vmem:[%s415_s10] sm:$0xf] (%p2418_p3)  ;;  %v433_v4 = vld [vmem:[%s415_s10 + $0x8] sm:$0xf] (%p2418_p3) }
  0x1c   : > { %432 = vst [vmem:[%s410_s30] sm:$0xf] (%p2418_p3), %v431_v3  ;;  %434 = vst [vmem:[%s410_s30 + $0x4] sm:$0xf] (%p2418_p3), %v433_v4 }
  0x1f PF: > { %p1892_p6 = scmp.ge.s32.totalorder %s2312_s23, 1  ;;  %p460_p7 = scmp.lt.s32.totalorder %s2312_s23, 3 }
  0x21   : > { %p461_p8 = pnand %p1892_p6, %p460_p7 }
  0x22   : > { %s467_s25 = sand.u32 (!%p461_p8), 1, %s2296_s19   ;;  %p1895_p9 = scmp.ne.s32.totalorder (!%p461_p8), %s2304_s21, 0 }
  0x23   : > { %464 = sbr.rel (%p461_p8) target bundleno = 1289 (0x509), region = 138  ;;  %s1893_s12 = sshll.u32 (!%p461_p8), %s467_s25, 3 }
  0x24   : > { %s469_s13 = scalar_lea.vmem (!%p461_p8), [#allocation5], %s1893_s12  ;;  %s476_s14 = scalar_lea.vmem (!%p461_p8), [#allocation6], %s1893_s12 }
  0x2a   : > { %517 = sbr.rel (%p1895_p9) target bundleno = 49 (0x31), region = 150  ;;  %vm518_vm0 = vcmask (!%p1895_p9), 517120   ;;  %v2314_v5 = vmov (!%p1895_p9), 0.0  }
  0x2b   : > { %519 = vst.msk [vmem:[#allocation2] sm:$0x3] (!%p1895_p9), %vm518_vm0, %v2314_v5  ;;  %520 = vst.msk [vmem:[#allocation3] sm:$0x3] (!%p1895_p9), %vm518_vm0, %v2314_v5 }
  0x31 PF: > { %v537_v6 = vld [vmem:[%s469_s13] sm:$0xf]  ;;  %vm603_vm1 = vcmask 1043456   ;;  %v804_v7 = vld [vmem:[%s476_s14] sm:$0xf]  ;;  %vm578_vm2 = vcmask 31744  }
  0x32   : > { %v521_v8 = vld [vmem:[%s2803_s2] sm:$0xff]  ;;  %2016 = vmatprep.subr.msk.mxu0 %vm603_vm1, %v537_v6  ;;  %2030 = vmatprep.subr.msk.mxu1 %vm603_vm1, %v804_v7  ;;  %v522_v9 = vld [vmem:[%s2803_s2 + $0x8] sm:$0xff]  ;;  %v523_v10 = vld [vmem:[%s2803_s2 + $0x10] sm:$0xff]  ;;  %v2315_v19 = vmov 0   ;;  %vm756_vm3 = vcmask 130112   ;;  %vm763_vm4 = vcmask 195712  }
  0x33   : > { %2017 = vmatpush3.msk.msra.mxu0 %vm603_vm1, %v537_v6  ;;  %2018 = vmatprep.mubr.msk.f32.mxu0 %vm578_vm2, %v521_v8  ;;  %v1914_v11 = vld [vmem:[%s469_s13 + $0x4] sm:$0xf]  ;;  %v1924_v12 = vld [vmem:[%s476_s14 + $0x4] sm:$0xf]  ;;  %vm770_vm5 = vcmask 261312   ;;  %vm777_vm6 = vcmask 326912  }
  0x34   : > { %2031 = vmatpush3.msk.msra.mxu1 %vm603_vm1, %v804_v7  ;;  %2032 = vmatprep.mubr.msk.f32.mxu1 %vm578_vm2, %v521_v8  ;;  %v524_v13 = vld [vmem:[%s2803_s2 + $0x18] sm:$0xff]  ;;  %v525_v14 = vld [vmem:[%s2803_s2 + $0x20] sm:$0xff]  ;;  %v531_v16 = vld [vmem:[%s2804_s3 + $0x10] sm:$0xff]  ;;  %vm784_vm7 = vcmask 392512   ;;  %vm791_vm8 = vcmask 458112   ;;  %vm798_vm9 = vcmask 523712  }
  0x35   : > { %2019 = vmatmul.mubr.msk.f32.vlgmr.msra.gmra.mrb[0].mxu0 %vm578_vm2, %v522_v9  ;;  %2033 = vmatmul.mubr.msk.f32.vlgmr.msra.gmra.mrb[0].mxu1 %vm578_vm2, %v522_v9  ;;  %v529_v15 = vld [vmem:[%s2804_s3] sm:$0xff]  ;;  %v526_v17 = vld [vmem:[%s2803_s2 + $0x28] sm:$0xff]  ;;  %v527_v18 = vld [vmem:[%s2803_s2 + $0x30] sm:$0xff]  ;;  %vm802_vm10 = vcmask 516096   ;;  %p1934_p10 = scmp.ne.s32.totalorder %s2304_s21, 1 }
  0x36   : > { %2021 = vmatprep.mubr.msk.f32.mxu0 %vm578_vm2, %v523_v10  ;;  %2035 = vmatprep.mubr.msk.f32.mxu1 %vm578_vm2, %v523_v10  ;;  %v530_v20 = vld [vmem:[%s2804_s3 + $0x8] sm:$0xff]  ;;  %v532_v21 = vld [vmem:[%s2804_s3 + $0x18] sm:$0xff]  ;;  %v533_v23 = vld [vmem:[%s2804_s3 + $0x20] sm:$0xff]  ;;  %vm2317_vm11 = vmmov (!%p1934_p10), 0   ;;  %vm1381_vm12 = vcmask (!%p1934_p10), 523264   ;;  %vm1777_vm13 = vcmask (!%p1934_p10), 254976  }
  0x37   : > { %2044 = vmatprep.subr.msk.mxu0 %vm603_vm1, %v1914_v11  ;;  %2058 = vmatprep.subr.msk.mxu1 %vm603_vm1, %v1924_v12  ;;  %v528_v22 = vld [vmem:[%s2803_s2 + $0x38] sm:$0xff]  ;;  %v534_v24 = vld [vmem:[%s2804_s3 + $0x28] sm:$0xff]  ;;  %v535_v25 = vld [vmem:[%s2804_s3 + $0x30] sm:$0xff]  ;;  %vm1536_vm14 = vcmask (!%p1934_p10), 261120   ;;  %s2319_s29 = smov (!%p1934_p10), 32   ;;  %vm1782_vm15 = vcmask (!%p1934_p10), 517376  }
  0x38   : > { %2045 = vmatpush3.msk.msra.mxu0 %vm603_vm1, %v1914_v11  ;;  %2059 = vmatpush3.msk.msra.mxu1 %vm603_vm1, %v1924_v12  ;;  %v536_v26 = vld [vmem:[%s2804_s3 + $0x38] sm:$0xff]  ;;  %s2320_s17 = smov (!%p1934_p10), 64   ;;  %s2321_s18 = smov (!%p1934_p10), 65   ;;  %vm1788_vm0 = vcmask (!%p1934_p10), 525824   ;;  %vm1794_vm1 = vcmask (!%p1934_p10), 534024  }
  0x39   : > { %2022 = vmatmul.mubr.msk.f32.gmra.mrb[2].mxu0 %vm578_vm2, %v524_v13  ;;  %2036 = vmatmul.mubr.msk.f32.gmra.mrb[2].mxu1 %vm578_vm2, %v524_v13 }
  0x3a   : > { %2024 = vmatprep.mubr.msk.f32.mxu0 %vm578_vm2, %v525_v14  ;;  %2038 = vmatprep.mubr.msk.f32.mxu1 %vm578_vm2, %v525_v14 }
  0x3b   : > { %2240 = vset.pattern.permute.xlu0 %v2315_v19  ;;  %2241 = vset.pattern.permute.xlu1 %v2315_v19 }
  0x3c   : > { %540 = vperm.xlu0 %2240, %v529_v15   ;;  %550 = vperm.xlu1 %2241, %v531_v16  }
  0x3d   : > { %2025 = vmatmul.mubr.msk.f32.gmra.mrb[4].mxu0 %vm578_vm2, %v526_v17  ;;  %2039 = vmatmul.mubr.msk.f32.gmra.mrb[4].mxu1 %vm578_vm2, %v526_v17 }
  0x3e   : > { %2027 = vmatprep.mubr.msk.f32.mxu0 %vm578_vm2, %v527_v18  ;;  %2041 = vmatprep.mubr.msk.f32.mxu1 %vm578_vm2, %v527_v18 }
  0x40   : > { %545 = vperm.xlu0 %2240, %v530_v20   ;;  %555 = vperm.xlu1 %2241, %v532_v21  }
  0x41   : > { %2028 = vmatmul.mubr.msk.f32.gmra.mrb[6].mxu0 %vm578_vm2, %v528_v22  ;;  %2042 = vmatmul.mubr.msk.f32.gmra.mrb[6].mxu1 %vm578_vm2, %v528_v22 }
  0x42   : > { %2046 = vmatprep.mubr.msk.f32.mxu0 %vm578_vm2, %v521_v8  ;;  %2060 = vmatprep.mubr.msk.f32.mxu1 %vm578_vm2, %v521_v8 }
  0x44   : > { %560 = vperm.xlu0 %2240, %v533_v23   ;;  %565 = vperm.xlu1 %2241, %v534_v24  }
  0x45   : > { %2047 = vmatmul.mubr.msk.f32.vlgmr.msra.gmra.mrb[8].mxu0 %vm578_vm2, %v522_v9  ;;  %2061 = vmatmul.mubr.msk.f32.vlgmr.msra.gmra.mrb[8].mxu1 %vm578_vm2, %v522_v9 }
  0x46   : > { %2049 = vmatprep.mubr.msk.f32.mxu0 %vm578_vm2, %v523_v10  ;;  %2063 = vmatprep.mubr.msk.f32.mxu1 %vm578_vm2, %v523_v10 }
  0x48   : > { %570 = vperm.xlu0 %2240, %v535_v25   ;;  %575 = vperm.xlu1 %2241, %v536_v26  }
  0x49   : > { %2050 = vmatmul.mubr.msk.f32.gmra.mrb[10].mxu0 %vm578_vm2, %v524_v13  ;;  %2064 = vmatmul.mubr.msk.f32.gmra.mrb[10].mxu1 %vm578_vm2, %v524_v13 }
  0x4a   : > { %2052 = vmatprep.mubr.msk.f32.mxu0 %vm578_vm2, %v525_v14  ;;  %2066 = vmatprep.mubr.msk.f32.mxu1 %vm578_vm2, %v525_v14 }
  0x4d   : > { %2053 = vmatmul.mubr.msk.f32.gmra.mrb[12].mxu0 %vm578_vm2, %v526_v17  ;;  %2067 = vmatmul.mubr.msk.f32.gmra.mrb[12].mxu1 %vm578_vm2, %v526_v17 }
  0x4e   : > { %2055 = vmatprep.mubr.msk.f32.mxu0 %vm578_vm2, %v527_v18  ;;  %2069 = vmatprep.mubr.msk.f32.mxu1 %vm578_vm2, %v527_v18 }
  0x51   : > { %2056 = vmatmul.mubr.msk.f32.gmra.mrb[14].mxu0 %vm578_vm2, %v528_v22  ;;  %2070 = vmatmul.mubr.msk.f32.gmra.mrb[14].mxu1 %vm578_vm2, %v528_v22  ;;  %vm1796_vm2 = vcmask (!%p1934_p10), 1041936  }
  0xbb   : > { %v2535_v27 = vpop.permute.xlu0 %540  ;;  %v2537_v28 = vpop.permute.xlu1 %550 }
  0xbf   : > { %v2539_v29 = vpop.permute.xlu0 %545  ;;  %v2543_v36 = vpop.permute.xlu1 %555 }
  0xc3   : > { %v2549_v54 = vpop.permute.xlu1 %565  ;;  %v2553_v62 = vpop.permute.xlu0 %560 }
  0xc7   : > { %v2557_v7 = vpop.permute.xlu1 %575  ;;  %v2561_v16 = vpop.permute.xlu0 %570 }
 0x108   : > { %v2020_v30 = vpop.f32.mrb[0].mxu0  ;;  %v2034_v31 = vpop.f32.mrb[0].mxu1 }
 0x109   : > { %v679_v32 = vadd.f32 %v2020_v30, %v2539_v29  ;;  %v880_v33 = vadd.f32 %v2034_v31, %v2539_v29  ;;  %v673_v34 = vpop.f32.mrb[1].mxu0  ;;  %v874_v35 = vpop.f32.mrb[1].mxu1 }
 0x10a   : > { %v674_v39 = vadd.f32 %v673_v34, %v2535_v27  ;;  %v875_v47 = vadd.f32 %v874_v35, %v2535_v27 }
 0x10b   : > { %v713_v37 = vmax.f32 %v679_v32, 0.0  ;;  %v914_v38 = vmax.f32 %v880_v33, 0.0 }
 0x10c   : > { %v2023_v40 = vpop.f32.mrb[2].mxu0  ;;  %v2037_v41 = vpop.f32.mrb[2].mxu1  ;;  %v712_v46 = vmax.f32 %v674_v39, 0.0  ;;  %v913_v55 = vmax.f32 %v875_v47, 0.0 }
 0x10d   : > { %v689_v42 = vadd.f32 %v2023_v40, %v2543_v36  ;;  %924 = vadd.xlane.f32.xlu0 %v914_v38  ;;  %723 = vadd.xlane.f32.xlu1 %v713_v37  ;;  %v683_v43 = vpop.f32.mrb[3].mxu0  ;;  %v884_v44 = vpop.f32.mrb[3].mxu1  ;;  %v890_v56 = vadd.f32 %v2037_v41, %v2543_v36 }
 0x10e   : > { %v684_v45 = vadd.f32 %v683_v43, %v2537_v28  ;;  %v885_v0 = vadd.f32 %v884_v44, %v2537_v28 }
 0x10f   : > { %v715_v48 = vmax.f32 %v689_v42, 0.0  ;;  %v916_v63 = vmax.f32 %v890_v56, 0.0 }
 0x110   : > { %v2026_v49 = vpop.f32.mrb[4].mxu0  ;;  %v2040_v50 = vpop.f32.mrb[4].mxu1  ;;  %v714_v51 = vmax.f32 %v684_v45, 0.0  ;;  %v915_v8 = vmax.f32 %v885_v0, 0.0 }
 0x111   : > { %v894_v52 = vpop.f32.mrb[5].mxu1  ;;  %727 = vadd.xlane.f32.xlu1 %v715_v48  ;;  %v693_v53 = vpop.f32.mrb[5].mxu0  ;;  %721 = vadd.xlane.f32.xlu0 %v712_v46  ;;  %v699_v57 = vadd.f32 %v2026_v49, %v2549_v54  ;;  %v900_v9 = vadd.f32 %v2040_v50, %v2549_v54 }
 0x112   : > { %v694_v2 = vadd.f32 %v693_v53, %v2553_v62  ;;  %v895_v18 = vadd.f32 %v894_v52, %v2553_v62 }
 0x113   : > { %v717_v1 = vmax.f32 %v699_v57, 0.0  ;;  %v918_v17 = vmax.f32 %v900_v9, 0.0 }
 0x114   : > { %v2029_v58 = vpop.f32.mrb[6].mxu0  ;;  %v2043_v59 = vpop.f32.mrb[6].mxu1  ;;  %v716_v10 = vmax.f32 %v694_v2, 0.0  ;;  %v917_v25 = vmax.f32 %v895_v18, 0.0 }
 0x115   : > { %v703_v60 = vpop.f32.mrb[7].mxu0  ;;  %v904_v61 = vpop.f32.mrb[7].mxu1  ;;  %725 = vadd.xlane.f32.xlu1 %v714_v51  ;;  %922 = vadd.xlane.f32.xlu0 %v913_v55  ;;  %v709_v11 = vadd.f32 %v2029_v58, %v2557_v7  ;;  %v910_v26 = vadd.f32 %v2043_v59, %v2557_v7 }
 0x116   : > { %v704_v20 = vadd.f32 %v703_v60, %v2561_v16  ;;  %v905_v38 = vadd.f32 %v904_v61, %v2561_v16 }
 0x117   : > { %v719_v19 = vmax.f32 %v709_v11, 0.0  ;;  %v920_v37 = vmax.f32 %v910_v26, 0.0 }
 0x118   : > { %v2048_v3 = vpop.f32.mrb[8].mxu0  ;;  %v2062_v4 = vpop.f32.mrb[8].mxu1  ;;  %v718_v30 = vmax.f32 %v704_v20, 0.0  ;;  %v919_v41 = vmax.f32 %v905_v38, 0.0 }
 0x119   : > { %v1059_v5 = vpop.f32.mrb[9].mxu0  ;;  %v1244_v6 = vpop.f32.mrb[9].mxu1  ;;  %731 = vadd.xlane.f32.xlu1 %v717_v1  ;;  %928 = vadd.xlane.f32.xlu0 %v916_v63  ;;  %v1065_v42 = vadd.f32 %v2048_v3, %v2539_v29  ;;  %v1250_v46 = vadd.f32 %v2062_v4, %v2539_v29  ;;  %v745_v4 = vlaneseq }
 0x11a   : > { %v1060_v31 = vadd.f32 %v1059_v5, %v2535_v27  ;;  %v1245_v40 = vadd.f32 %v1244_v6, %v2535_v27 }
 0x11b   : > { %v1099_v45 = vmax.f32 %v1065_v42, 0.0  ;;  %v1284_v49 = vmax.f32 %v1250_v46, 0.0  ;;  %v746_v6 = vand.u32 127, %v745_v4  ;;  %v748_v11 = vshrl.u32 %v745_v4, 7 }
 0x11c   : > { %v2051_v12 = vpop.f32.mrb[10].mxu0  ;;  %v2065_v13 = vpop.f32.mrb[10].mxu1  ;;  %v1098_v39 = vmax.f32 %v1060_v31, 0.0  ;;  %v1283_v43 = vmax.f32 %v1245_v40, 0.0 }
 0x11d   : > { %v1069_v14 = vpop.f32.mrb[11].mxu0  ;;  %v1254_v15 = vpop.f32.mrb[11].mxu1  ;;  %729 = vadd.xlane.f32.xlu1 %v716_v10  ;;  %926 = vadd.xlane.f32.xlu0 %v915_v8  ;;  %v1075_v44 = vadd.f32 %v2051_v12, %v2543_v36  ;;  %v1260_v27 = vadd.f32 %v2065_v13, %v2543_v36  ;;  %v758_v10 = vadd.s32 4294967280, %v746_v6  ;;  %v751_v12 = vadd.s32 4294967288, %v746_v6 }
 0x11e   : > { %v1070_v48 = vadd.f32 %v1069_v14, %v2537_v28  ;;  %v1255_v53 = vadd.f32 %v1254_v15, %v2537_v28  ;;  %v765_v15 = vadd.s32 4294967272, %v746_v6  ;;  %v779_v26 = vadd.s32 4294967256, %v746_v6 }
 0x11f   : > { %v1101_v47 = vmax.f32 %v1075_v44, 0.0  ;;  %v1286_v52 = vmax.f32 %v1260_v27, 0.0  ;;  %v2587_v18 = vsub.s32 %v751_v12, %v748_v11 }
 0x120   : > { %v2054_v21 = vpop.f32.mrb[12].mxu0  ;;  %v2068_v22 = vpop.f32.mrb[12].mxu1  ;;  %v1100_v50 = vmax.f32 %v1070_v48, 0.0  ;;  %v1285_v29 = vmax.f32 %v1255_v53, 0.0 }
 0x121   : > { %v1079_v23 = vpop.f32.mrb[13].mxu0  ;;  %v1264_v24 = vpop.f32.mrb[13].mxu1  ;;  %735 = vadd.xlane.f32.xlu1 %v719_v19  ;;  %932 = vadd.xlane.f32.xlu0 %v918_v17  ;;  %v1085_v51 = vadd.f32 %v2054_v21, %v2549_v54  ;;  %v1270_v57 = vadd.f32 %v2068_v22, %v2549_v54  ;;  %v2585_v17 = vsub.s32 %v758_v10, %v748_v11 }
 0x122   : > { %v1080_v56 = vadd.f32 %v1079_v23, %v2553_v62  ;;  %v1265_v60 = vadd.f32 %v1264_v24, %v2553_v62  ;;  %v2589_v21 = vsub.s32 %v765_v15, %v748_v11 }
 0x123   : > { %v1103_v55 = vmax.f32 %v1085_v51, 0.0  ;;  %v1288_v36 = vmax.f32 %v1270_v57, 0.0 }
 0x124   : > { %v2057_v32 = vpop.f32.mrb[14].mxu0  ;;  %v2071_v33 = vpop.f32.mrb[14].mxu1  ;;  %v1102_v58 = vmax.f32 %v1080_v56, 0.0  ;;  %v1287_v28 = vmax.f32 %v1265_v60, 0.0 }
 0x125   : > { %v1089_v34 = vpop.f32.mrb[15].mxu0  ;;  %v1274_v35 = vpop.f32.mrb[15].mxu1  ;;  %733 = vadd.xlane.f32.xlu1 %v718_v30  ;;  %930 = vadd.xlane.f32.xlu0 %v917_v25  ;;  %v1095_v61 = vadd.f32 %v2057_v32, %v2557_v7  ;;  %v1280_v54 = vadd.f32 %v2071_v33, %v2557_v7  ;;  %v772_v7 = vadd.s32 4294967264, %v746_v6  ;;  %v786_v32 = vadd.s32 4294967248, %v746_v6 }
 0x126   : > { %v1090_v59 = vadd.f32 %v1089_v34, %v2561_v16  ;;  %v1275_v1 = vadd.f32 %v1274_v35, %v2561_v16  ;;  %v2583_v16 = vsub.s32 %v746_v6, %v748_v11  ;;  %v793_v35 = vadd.s32 4294967240, %v746_v6 }
 0x127   : > { %v1105_v0 = vmax.f32 %v1095_v61, 0.0  ;;  %v1290_v3 = vmax.f32 %v1280_v54, 0.0  ;;  %v2593_v24 = vsub.s32 %v772_v7, %v748_v11  ;;  %v2602_v42 = vsub.s32 %v786_v32, %v748_v11 }
 0x128   : > { %v1104_v63 = vmax.f32 %v1090_v59, 0.0  ;;  %v1289_v2 = vmax.f32 %v1275_v1, 0.0 }
 0x129   : > { %1107 = vadd.xlane.f32.xlu1 %v1098_v39  ;;  %936 = vadd.xlane.f32.xlu0 %v920_v37  ;;  %v2600_v39 = vsub.s32 %v779_v26, %v748_v11 }
 0x12d   : > { %1292 = vadd.xlane.f32.xlu1 %v1283_v43  ;;  %934 = vadd.xlane.f32.xlu0 %v919_v41 }
 0x131   : > { %1113 = vadd.xlane.f32.xlu1 %v1101_v47  ;;  %1109 = vadd.xlane.f32.xlu0 %v1099_v45  ;;  %v2606_v45 = vsub.s32 %v793_v35, %v748_v11 }
 0x135   : > { %1111 = vadd.xlane.f32.xlu1 %v1100_v50  ;;  %1294 = vadd.xlane.f32.xlu0 %v1284_v49 }
 0x139   : > { %1117 = vadd.xlane.f32.xlu1 %v1103_v55  ;;  %1298 = vadd.xlane.f32.xlu0 %v1286_v52  ;;  %v720_v55 = vld [vmem:[#allocation2] sm:$0x1] }
 0x13d   : > { %1115 = vadd.xlane.f32.xlu1 %v1102_v58  ;;  %1296 = vadd.xlane.f32.xlu0 %v1285_v29 }
 0x141   : > { %1119 = vadd.xlane.f32.xlu1 %v1104_v63  ;;  %1302 = vadd.xlane.f32.xlu0 %v1288_v36 }
 0x145   : > { %1121 = vadd.xlane.f32.xlu1 %v1105_v0  ;;  %1300 = vadd.xlane.f32.xlu0 %v1287_v28 }
 0x149   : > { %1304 = vadd.xlane.f32.xlu0 %v1289_v2 }
 0x14d   : > { %1306 = vadd.xlane.f32.xlu0 %v1290_v3 }
 0x19a   : > { %v925_v5 = vpop.xlane.xlu0 %924  ;;  %v724_v62 = vpop.xlane.xlu1 %723 }
 0x19b   : > { %v755_v25 = vrot.slane %v724_v62, %v2587_v18  ;;  %v953_v48 = vrot.slane %v925_v5, %v2587_v18  ;;  %v921_v5 = vld [vmem:[#allocation3] sm:$0x1] }
 0x19e   : > { %v728_v8 = vpop.xlane.xlu1 %727  ;;  %v722_v9 = vpop.xlane.xlu0 %721 }
 0x19f   : > { %v750_v22 = vrot.slane %v722_v9, %v2583_v16  ;;  %v769_v33 = vrot.slane %v728_v8, %v2589_v21 }
 0x1a1   : > { %v757_v34 = vsel %vm756_vm3, %v755_v25, %v750_v22 }
 0x1a2   : > { %v726_v13 = vpop.xlane.xlu1 %725  ;;  %v923_v14 = vpop.xlane.xlu0 %922 }
 0x1a3   : > { %v762_v23 = vrot.slane %v726_v13, %v2585_v17  ;;  %v949_v43 = vrot.slane %v923_v14, %v2583_v16 }
 0x1a5   : > { %v764_v37 = vsel %vm763_vm4, %v762_v23, %v757_v34  ;;  %v954_v52 = vsel %vm756_vm3, %v953_v48, %v949_v43 }
 0x1a6   : > { %v732_v19 = vpop.xlane.xlu1 %731  ;;  %v929_v20 = vpop.xlane.xlu0 %928  ;;  %v771_v44 = vsel %vm770_vm5, %v769_v33, %v764_v37 }
 0x1a7   : > { %v783_v49 = vrot.slane %v732_v19, %v2600_v39  ;;  %v963_v59 = vrot.slane %v929_v20, %v2589_v21 }
 0x1aa   : > { %v730_v30 = vpop.xlane.xlu1 %729  ;;  %v927_v31 = vpop.xlane.xlu0 %926 }
 0x1ab   : > { %v776_v38 = vrot.slane %v730_v30, %v2593_v24  ;;  %v958_v47 = vrot.slane %v927_v31, %v2585_v17 }
 0x1ad   : > { %v778_v46 = vsel %vm777_vm6, %v776_v38, %v771_v44  ;;  %v959_v29 = vsel %vm763_vm4, %v958_v47, %v954_v52 }
 0x1ae   : > { %v736_v40 = vpop.xlane.xlu1 %735  ;;  %v933_v41 = vpop.xlane.xlu0 %932  ;;  %v785_v56 = vsel %vm784_vm7, %v783_v49, %v778_v46  ;;  %v964_v28 = vsel %vm770_vm5, %v963_v59, %v959_v29  ;;  %v1106_v49 = vld [vmem:[#allocation2 + $0x1] sm:$0x1] }
 0x1af   : > { %v797_v53 = vrot.slane %v736_v40, %v2606_v45  ;;  %v973_v1 = vrot.slane %v933_v41, %v2600_v39 }
 0x1b2   : > { %v734_v27 = vpop.xlane.xlu1 %733  ;;  %v931_v50 = vpop.xlane.xlu0 %930 }
 0x1b3   : > { %v790_v51 = vrot.slane %v734_v27, %v2602_v42  ;;  %v968_v58 = vrot.slane %v931_v50, %v2593_v24 }
 0x1b5   : > { %v792_v57 = vsel %vm791_vm8, %v790_v51, %v785_v56  ;;  %v969_v0 = vsel %vm777_vm6, %v968_v58, %v964_v28 }
 0x1b6   : > { %v799_v36 = vsel %vm798_vm9, %v797_v53, %v792_v57  ;;  %v1108_v60 = vpop.xlane.xlu1 %1107  ;;  %v937_v61 = vpop.xlane.xlu0 %936  ;;  %v974_v62 = vsel %vm784_vm7, %v973_v1, %v969_v0  ;;  %v1369_v0 = vld [vmem:[%s2805_s4 + $0x18] sm:$0xff] (!%p1934_p10)  ;;  %v2318_v1 = vmov (!%p1934_p10), 0.0  }
 0x1b7   : > { %v801_v63 = vadd.f32 %v799_v36, %v720_v55  ;;  %v983_v4 = vrot.slane %v937_v61, %v2606_v45  ;;  %v1134_v20 = vrot.slane %v1108_v60, %v2583_v16  ;;  %2088 = vmatprep.mubr.msk.f32.mxu0 (!%p1934_p10), %vm2317_vm11, %v2318_v1  ;;  %2107 = vmatprep.mubr.msk.f32.mxu1 (!%p1934_p10), %vm2317_vm11, %v2318_v1 }
 0x1b9   : > { %803 = vst.msk [vmem:[#allocation2] sm:$0x1] %vm802_vm10, %v801_v63  ;;  %v2316_v63 = vmov (!%p1934_p10), 0.0|0.0  }
 0x1ba   : > { %v1293_v54 = vpop.xlane.xlu1 %1292  ;;  %v935_v2 = vpop.xlane.xlu0 %934  ;;  %2143 = vmatprep.subr.bf16.mxu0 (!%p1934_p10), %v2316_v63  ;;  %2155 = vmatprep.subr.bf16.mxu1 (!%p1934_p10), %v2316_v63 }
 0x1bb   : > { %v978_v3 = vrot.slane %v935_v2, %v2602_v42  ;;  %v1319_v41 = vrot.slane %v1293_v54, %v2583_v16  ;;  %v1370_v2 = vld [vmem:[%s2805_s4 + $0x20] sm:$0xff] (!%p1934_p10) }
 0x1bd   : > { %v979_v6 = vsel %vm791_vm8, %v978_v3, %v974_v62  ;;  %v1371_v3 = vld [vmem:[%s2805_s4 + $0x28] sm:$0xff] (!%p1934_p10)  ;;  %v1373_v62 = vld [vmem:[%s2805_s4 + $0x38] sm:$0xff] (!%p1934_p10) }
 0x1be   : > { %v984_v8 = vsel %vm798_vm9, %v983_v4, %v979_v6  ;;  %v1114_v9 = vpop.xlane.xlu1 %1113  ;;  %v1110_v10 = vpop.xlane.xlu0 %1109  ;;  %v2150_v4 = vpack.c.bf16 (!%p1934_p10), %v1371_v3, %v1370_v2 }
 0x1bf   : > { %v986_v11 = vadd.f32 %v984_v8, %v921_v5  ;;  %v1138_v7 = vrot.slane %v1110_v10, %v2587_v18  ;;  %v1148_v31 = vrot.slane %v1114_v9, %v2589_v21  ;;  %v1372_v5 = vld [vmem:[%s2805_s4 + $0x30] sm:$0xff] (!%p1934_p10)  ;;  %v1532_v10 = vld [vmem:[%s2808_s7] sm:$0xff] (!%p1934_p10) }
 0x1c0   : > { %v2153_v6 = vpack.c.bf16 (!%p1934_p10), %v1373_v62, %v1372_v5 }
 0x1c1   : > { %987 = vst.msk [vmem:[#allocation3] sm:$0x1] %vm802_vm10, %v986_v11  ;;  %v1139_v25 = vsel %vm756_vm3, %v1138_v7, %v1134_v20  ;;  %v1533_v11 = vld [vmem:[%s2808_s7 + $0x8] sm:$0xff] (!%p1934_p10)  ;;  %v1534_v20 = vld [vmem:[%s2808_s7 + $0x10] sm:$0xff] (!%p1934_p10) }
 0x1c2   : > { %v1112_v12 = vpop.xlane.xlu1 %1111  ;;  %v1295_v13 = vpop.xlane.xlu0 %1294  ;;  %v2168_v7 = vpack.c.bf16 (!%p1934_p10), %v1533_v11, %v1532_v10 }
 0x1c3   : > { %v1143_v19 = vrot.slane %v1112_v12, %v2585_v17  ;;  %v1323_v34 = vrot.slane %v1295_v13, %v2587_v18  ;;  %v1528_v12 = vld [vmem:[%s2807_s6] sm:$0xff] (!%p1934_p10)  ;;  %v1529_v13 = vld [vmem:[%s2807_s6 + $0x8] sm:$0xff] (!%p1934_p10) }
 0x1c5   : > { %v1144_v26 = vsel %vm763_vm4, %v1143_v19, %v1139_v25  ;;  %v1324_v47 = vsel %vm756_vm3, %v1323_v34, %v1319_v41  ;;  %v2174_v19 = vpack.c.bf16 (!%p1934_p10), %v1529_v13, %v1528_v12  ;;  %v1693_v41 = vld [vmem:[%s2810_s9 + $0x8] sm:$0xff] (!%p1934_p10) }
 0x1c6   : > { %v1118_v14 = vpop.xlane.xlu1 %1117  ;;  %v1299_v15 = vpop.xlane.xlu0 %1298  ;;  %v1149_v35 = vsel %vm770_vm5, %v1148_v31, %v1144_v26  ;;  %v1531_v26 = vld [vmem:[%s2807_s6 + $0x18] sm:$0xff] (!%p1934_p10)  ;;  %v1935_v31 = vld [vmem:[%s2806_s5] ss:$0 sm:$0xff] (!%p1934_p10) }
 0x1c7   : > { %v1158_v43 = vrot.slane %v1118_v14, %v2600_v39  ;;  %v1333_v51 = vrot.slane %v1299_v15, %v2589_v21 }
 0x1ca   : > { %v1116_v22 = vpop.xlane.xlu1 %1115  ;;  %v1297_v23 = vpop.xlane.xlu0 %1296 }
 0x1cb   : > { %v1153_v30 = vrot.slane %v1116_v22, %v2593_v24  ;;  %v1328_v38 = vrot.slane %v1297_v23, %v2585_v17  ;;  %v1535_v22 = vld [vmem:[%s2808_s7 + $0x18] sm:$0xff] (!%p1934_p10)  ;;  %v1530_v23 = vld [vmem:[%s2807_s6 + $0x10] sm:$0xff] (!%p1934_p10) }
 0x1cc   : > { %v2171_v25 = vpack.c.bf16 (!%p1934_p10), %v1535_v22, %v1534_v20 }
 0x1cd   : > { %v1154_v37 = vsel %vm777_vm6, %v1153_v30, %v1149_v35  ;;  %v1329_v27 = vsel %vm763_vm4, %v1328_v38, %v1324_v47  ;;  %v2177_v30 = vpack.c.bf16 (!%p1934_p10), %v1531_v26, %v1530_v23 }
 0x1ce   : > { %v1120_v32 = vpop.xlane.xlu1 %1119  ;;  %v1303_v33 = vpop.xlane.xlu0 %1302  ;;  %v1159_v48 = vsel %vm784_vm7, %v1158_v43, %v1154_v37  ;;  %v1334_v55 = vsel %vm770_vm5, %v1333_v51, %v1329_v27  ;;  %v1940_v27 = vld [vmem:[%s2809_s8] ss:$0 sm:$0xff] (!%p1934_p10) }
 0x1cf   : > { %v1163_v40 = vrot.slane %v1120_v32, %v2602_v42  ;;  %v1343_v57 = vrot.slane %v1303_v33, %v2600_v39  ;;  %v1366_v39 = vld [vmem:[%s2805_s4] sm:$0xff] (!%p1934_p10) }
 0x1d1   : > { %v1164_v50 = vsel %vm791_vm8, %v1163_v40, %v1159_v48  ;;  %v1692_v40 = vld [vmem:[%s2810_s9] sm:$0xff] (!%p1934_p10) }
 0x1d2   : > { %v1122_v44 = vpop.xlane.xlu1 %1121  ;;  %v1301_v46 = vpop.xlane.xlu0 %1300  ;;  %v2180_v43 = vpack.c.bf16 (!%p1934_p10), %v1693_v41, %v1692_v40 }
 0x1d3   : > { %v1168_v18 = vrot.slane %v1122_v44, %v2606_v45  ;;  %v1338_v17 = vrot.slane %v1301_v46, %v2593_v24  ;;  %v1291_v24 = vld [vmem:[#allocation3 + $0x1] sm:$0x1]  ;;  %v1694_v44 = vld [vmem:[%s2810_s9 + $0x10] sm:$0xff] (!%p1934_p10)  ;;  %v1695_v46 = vld [vmem:[%s2810_s9 + $0x18] sm:$0xff] (!%p1934_p10) }
 0x1d4   : > { %v2183_v47 = vpack.c.bf16 (!%p1934_p10), %v1695_v46, %v1694_v44 }
 0x1d5   : > { %v1169_v16 = vsel %vm798_vm9, %v1168_v18, %v1164_v50  ;;  %v1339_v56 = vsel %vm777_vm6, %v1338_v17, %v1334_v55 }
 0x1d6   : > { %v1171_v52 = vadd.f32 %v1169_v16, %v1106_v49  ;;  %v1305_v53 = vpop.xlane.xlu0 %1304  ;;  %v1344_v59 = vsel %vm784_vm7, %v1343_v57, %v1339_v56 }
 0x1d7   : > { %v1348_v29 = vrot.slane %v1305_v53, %v2602_v42  ;;  %v1367_v42 = vld [vmem:[%s2805_s4 + $0x8] sm:$0xff] (!%p1934_p10)  ;;  %v1941_v53 = vld [vmem:[#allocation4] ss:$0 sm:$0xff] (!%p1934_p10) }
 0x1d8   : > { %1172 = vst.msk [vmem:[#allocation2 + $0x1] sm:$0x1] %vm802_vm10, %v1171_v52  ;;  %v2144_v28 = vpack.c.bf16 (!%p1934_p10), %v1367_v42, %v1366_v39 }
 0x1d9   : > { %v1349_v36 = vsel %vm791_vm8, %v1348_v29, %v1344_v59 }
 0x1da   : > { %v1307_v58 = vpop.xlane.xlu0 %1306  ;;  %1361 = sbr.rel (%p1934_p10) target bundleno = 1264 (0x4f0), region = 154  ;;  %2145 = vmatpush3.bf16.msra.mxu0 (!%p1934_p10), %v2144_v28  ;;  %2157 = vmatpush3.bf16.msra.mxu1 (!%p1934_p10), %v2144_v28 }
 0x1db   : > { %v1353_v21 = vrot.slane %v1307_v58, %v2606_v45  ;;  %v1368_v45 = vld [vmem:[%s2805_s4 + $0x10] sm:$0xff] (!%p1934_p10)  ;;  %2146 = vmatprep.subr.bf16.mxu0 (!%p1934_p10), %v2316_v63  ;;  %2158 = vmatprep.subr.bf16.mxu1 (!%p1934_p10), %v2316_v63 }
 0x1dc   : > { %v2147_v54 = vpack.c.bf16 (!%p1934_p10), %v1369_v0, %v1368_v45 }
 0x1dd   : > { %v1354_v60 = vsel %vm798_vm9, %v1353_v21, %v1349_v36 }
 0x1de   : > { %v1356_v61 = vadd.f32 %v1354_v60, %v1291_v24  ;;  %2148 = vmatpush3.bf16.msra.mxu0 (!%p1934_p10), %v2147_v54  ;;  %2160 = vmatpush3.bf16.msra.mxu1 (!%p1934_p10), %v2147_v54 }
 0x1df   : > { %2149 = vmatprep.subr.bf16.mxu0 (!%p1934_p10), %v2316_v63  ;;  %2161 = vmatprep.subr.bf16.mxu1 (!%p1934_p10), %v2316_v63  ;;  %v1362_v8 = vld [vmem:[#allocation2] sm:$0x3] (!%p1934_p10) }
 0x1e0   : > { %1357 = vst.msk [vmem:[#allocation3 + $0x1] sm:$0x1] %vm802_vm10, %v1356_v61  ;;  %v1363_v14 = vmul.f32 (!%p1934_p10), 0.00390625, %v1362_v8 }
 0x1e2   : > { %2151 = vmatpush3.bf16.msra.mxu0 %v2150_v4  ;;  %2163 = vmatpush3.bf16.msra.mxu1 %v2150_v4 }
 0x1e3   : > { %2152 = vmatprep.subr.bf16.mxu0 %v2316_v63  ;;  %2164 = vmatprep.subr.bf16.mxu1 %v2316_v63 }
 0x1e6   : > { %2154 = vmatpush3.bf16.msra.mxu0 %v2153_v6  ;;  %2166 = vmatpush3.bf16.msra.mxu1 %v2153_v6 }
 0x1e7   : > { %v1364_v9 = vld [vmem:[#allocation3] sm:$0x3]  ;;  %2167 = vmatprep.subr.bf16.mxu0 %v2316_v63  ;;  %2173 = vmatprep.subr.bf16.mxu1 %v2316_v63 }
 0x1e8   : > { %v1365_v15 = vmul.f32 0.00390625, %v1364_v9 }
 0x1e9   : > { %2089 = vmatmul.mubr.msk.f32.vlgmr.msra.gmra.mrb[0].mxu0 %vm1381_vm12, %v1363_v14 }
 0x1ea   : > { %2108 = vmatmul.mubr.msk.f32.vlgmr.msra.gmra.mrb[0].mxu1 %vm1381_vm12, %v1365_v15  ;;  %2169 = vmatpush3.bf16.msra.mxu0 %v2168_v7 }
 0x1eb   : > { %2175 = vmatpush3.bf16.msra.mxu1 %v2174_v19  ;;  %2170 = vmatprep.subr.bf16.mxu0 %v2316_v63 }
 0x1ec   : > { %2176 = vmatprep.subr.bf16.mxu1 %v2316_v63  ;;  %2118 = vmatprep.mubr.msk.f32.mxu0 %vm2317_vm11, %v2318_v1 }
 0x1ed   : > { %2129 = vmatprep.mubr.msk.f32.mxu1 %vm2317_vm11, %v2318_v1 }
 0x1ee   : > { %2172 = vmatpush3.bf16.msra.mxu0 %v2171_v25 }
 0x1ef   : > { %2178 = vmatpush3.bf16.msra.mxu1 %v2177_v30  ;;  %2179 = vmatprep.subr.bf16.mxu0 %v2316_v63 }
 0x2bc   : > { %v1451_v32 = vpop.f32.mrb[0].mxu0 }
 0x2bd   : > { %v1524_v33 = vpop.f32.mrb[0].mxu1  ;;  %v1452_v34 = vadd.f32 %v1935_v31, %v1451_v32  ;;  %v2090_v37 = vpop.f32.mrb[1].mxu0 }
 0x2be   : > { %v1525_v35 = vadd.f32 %v1935_v31, %v1524_v33  ;;  %v2109_v38 = vpop.f32.mrb[1].mxu1 }
 0x2bf   : > { %1778 = vst.msk [vmem:[#allocation7] sm:$0x3] %vm1777_vm13, %v1452_v34  ;;  %2130 = vmatmul.mubr.msk.f32.vlgmr.msra.gmra.mrb[2].mxu1 %vm1536_vm14, %v1452_v34 }
 0x2c0   : > { %1779 = vrot.lane.b32.xlu0 %v1525_v35, %s2319_s29  ;;  %2119 = vmatmul.mubr.msk.f32.vlgmr.msra.gmra.mrb[2].mxu0 %vm1536_vm14, %v1525_v35 }
 0x2c1   : > { %2140 = vmatprep.mubr.msk.f32.mxu0 %vm2317_vm11, %v2318_v1  ;;  %2181 = vmatpush3.bf16.msra.mxu0 %v2180_v43 }
 0x2c2   : > { %2182 = vmatprep.subr.bf16.mxu0 %v2316_v63 }
 0x2c5   : > { %2184 = vmatpush3.bf16.msra.mxu0 %v2183_v47 }
 0x332   : > { %v1780_v48 = vpop.permute.xlu0 %1779 }
 0x333   : > { %1783 = vst.msk [vmem:[#allocation7] sm:$0x3] %vm1782_vm15, %v1780_v48 }
 0x392   : > { %v1679_v18 = vpop.f32.mrb[2].mxu1 }
 0x393   : > { %v1606_v49 = vpop.f32.mrb[2].mxu0  ;;  %v2131_v51 = vpop.f32.mrb[3].mxu1 }
 0x394   : > { %v2120_v50 = vpop.f32.mrb[3].mxu0  ;;  %v1680_v17 = vadd.f32 %v1679_v18, %v1606_v49 }
 0x396   : > { %v1690_v16 = vadd.f32 %v1940_v27, %v1680_v17 }
 0x398   : > { %v1691_v52 = vmax.f32 %v1690_v16, 0.0 }
 0x39a   : > { %2141 = vmatmul.mubr.msk.f32.vlgmr.msra.gmra.mrb[4].mxu0 %vm1536_vm14, %v1691_v52 }
 0x46d   : > { %v1772_v55 = vpop.f32.mrb[4].mxu0 }
 0x46e   : > { %v1773_v56 = vadd.f32 %v1941_v53, %v1772_v55  ;;  %v2142_v29 = vpop.f32.mrb[5].mxu0 }
 0x470   : > { %2242 = vtanh.f32 %v1773_v56  ;;  %1785 = vrot.lane.b32.xlu0 %v1773_v56, %s2320_s17 }
 0x47a   : > { %v2243_v57 = vpop.eup %2242 }
 0x47b   : > { %1791 = vrot.lane.b32.xlu1 %v2243_v57, %s2321_s18 }
 0x4e2   : > { %v1786_v58 = vpop.permute.xlu0 %1785 }
 0x4e3   : > { %1789 = vst.msk [vmem:[#allocation7] sm:$0x3] %vm1788_vm0, %v1786_v58 }
 0x4ed   : > { %v1792_v59 = vpop.permute.xlu1 %1791 }
 0x4ee   : > { %1795 = vst.msk [vmem:[#allocation7] sm:$0x3] %vm1794_vm1, %v1792_v59 }
 0x4ef   : > { %1797 = vst.msk [vmem:[#allocation7] sm:$0x3] %vm1796_vm2, %v2318_v1 }
 0x4f0 PF: > { %s2814_s26 = sadd.s32 4294967295, %s2312_s23   ;;  %s2322_s29 = smov [#allocation7]  }
 0x4f1   : > { %p2760_p11 = scmp.eq.s32.totalorder %s2814_s26, 1  ;;  %s1807_s30 = sshll.u32 %s2322_s29, 4  ;;  %s1808_s30 = int_to_ptr.vmem [resolvable:$true] %s1807_s30 }
 0x4f2   : > { %s2244_s21 = scalar_lea.vmem %s1808_s30, 32  ;;  %p2251_p1 = scmp.lt.s32.totalorder %s1808_s30, %s1808_s30 }
 0x4f3   : > { %p2245_p12 = scmp.ne.s32.totalorder %s1808_s30, %s2244_s21  ;;  %p2252_p2 = scmp.lt.s32.totalorder %s2244_s21, %s2244_s21 }
 0x4f5   : > { %p2246_p13 = pnand %p2245_p12, %p2760_p11  ;;  %p2253_p3 = por %p2252_p2, %p2251_p1 }
 0x4f7   : > { %p2247_p0 = pneg %p2246_p13 }
 0x4f9   : > { %p2254_p4 = pnand %p2253_p3, %p2247_p0 }
 0x4fb   : > { %2257 = shalt.err (!%p2254_p4)
}
 0x4fc   : > { %s2258_s13 = scalar_lea.hbm %s2812_s11, 32 }
 0x4fd   : > { %p2259_p5 = scmp.ne.s32.totalorder %s2812_s11, %s2258_s13  ;;  %p2264_p8 = scmp.lt.u32.totalorder %s2258_s13, %s2812_s11 }
 0x4ff   : > { %p2260_p6 = pnand %p2259_p5, %p2760_p11 }
 0x501   : > { %p2261_p7 = pneg %p2260_p6 }
 0x503   : > { %p2266_p9 = pnand %p2264_p8, %p2261_p7 }
 0x505   : > { %2269 = shalt.err (!%p2266_p9)
}
 0x506   : > { %2186 = dma.vmem_to_hbm [thread:$0]  (%p2760_p11), %s1808_s30, 32, %s2812_s11, [#allocation8]  }
 0x507   : > { %2291 = dma.done.wait (%p2760_p11), [#allocation8], 32  }
 0x508   : > { %2293 = vsyncadd (%p2760_p11), [#allocation8], 4294967264 }
 0x509 PF: > { %s24_s23 = sadd.s32 1, %s2312_s23   ;;  %s2816_s19 = smov %s2300_s20 }
 0x50a   : > { %p21_p10 = scmp.ge.s32.totalorder %s24_s23, 4   ;;  %s2817_s20 = smov %s2426_s28 }
 0x50b   : > { %s2818_s21 = smov %s2308_s22  ;;  %s2819_s22 = smov %s2821_s24 }
 0x50c   :  { %23 = sbr.rel (!%p21_p10) target bundleno = 6 (0x6), region = 197 }
 0x513   :  { %1820 = vsyncpa [#allocation8], 1 }
 0x514   :  { %1822 = vsyncpa [#allocation8 + $0x1], 1 }

</bundles_post_ra>
